<compile_context>
chip_gen: v7x
topology: tpu7x:2x2x1
jax: 0.10.0
libtpu: 0.0.40
codegen_flags: <defaults>
</compile_context>

<pallas_src>
import jax
import jax.numpy as jnp
from jax.experimental import pallas as pl
from jax.experimental.pallas import tpu as pltpu

REPR_DIM = 256
ACTION_DIM = 2
BN_EPS = 1e-5           # nn.BatchNorm1d default eps
L2_EPS = 1e-12          # F.normalize default eps


def predictor_kernel(emb_ref, act_ref, w1e_ref, w1a_ref, gamma_ref, beta_ref,
                     w2_ref, b2_ref, o_ref):
    # emb_ref: (B, 256) f32      act_ref: (B, 2) f32
    # w1e_ref: (256, 256) bf16   w1a_ref: (2, 256) bf16   w2_ref: (256, 256) bf16
    # gamma/beta/b2: (1, 256) f32                          o_ref: (B, 256) f32
    emb = emb_ref[...].astype(jnp.bfloat16)
    act = act_ref[...].astype(jnp.bfloat16)

    # fc1: both the embedding (K=256) and action (K=2) contributions on the MXU,
    # bf16 operands with f32 accumulation. fc1 bias omitted: a per-feature constant
    # cancels exactly under the train-mode BatchNorm mean subtraction below.
    h = jnp.dot(emb, w1e_ref[...], preferred_element_type=jnp.float32)
    h = h + jnp.dot(act, w1a_ref[...], preferred_element_type=jnp.float32)

    # BatchNorm1d, training mode (biased batch stats), two-pass centered variance
    # (avoids E[h^2]-mean^2 cancellation); rsqrt goes to the otherwise-idle EUP.
    mean = jnp.mean(h, axis=0, keepdims=True)
    centered = h - mean
    var = jnp.mean(centered * centered, axis=0, keepdims=True)
    scale = gamma_ref[...] * jax.lax.rsqrt(var + BN_EPS)

    # affine + ReLU in one FMA + max
    h = jnp.maximum(centered * scale + beta_ref[...], 0.0)

    # fc2 (bf16 operands, f32 accumulation) + bias
    y = jnp.dot(h.astype(jnp.bfloat16), w2_ref[...],
                preferred_element_type=jnp.float32) + b2_ref[...]

    # F.normalize(dim=1): y / max(||y||, eps) == y * rsqrt(max(sumsq, eps^2))
    sumsq = jnp.sum(y * y, axis=1, keepdims=True)
    o_ref[...] = y * jax.lax.rsqrt(jnp.maximum(sumsq, L2_EPS * L2_EPS))


def predictor_forward(embedding, action, params):
    """Fused Predictor forward.

    embedding: (S, B, REPR_DIM) or (B, REPR_DIM) f32
    action:    (S, B, ACTION_DIM) or (B, ACTION_DIM) f32
    Each of the S leading entries is an independent BatchNorm batch of size B
    (equivalent to S independent calls to the PyTorch module in train mode).
    """
    squeeze = embedding.ndim == 2
    if squeeze:
        embedding = embedding[None]
        action = action[None]
    S, B, _ = embedding.shape
    w1e, w1a, _b1, gamma, beta, w2t, b2 = params   # b1 unused: cancels under train-mode BN

    # Streaming per-batch blocks (leading grid axis squeezed away inside the kernel).
    batch_spec = lambda last: pl.BlockSpec((None, B, last), lambda s: (s, 0, 0))
    # VMEM-resident parameters: constant block index across the whole grid.
    resident = lambda shape: pl.BlockSpec(shape, lambda s: (0,) * len(shape))

    flops = 2 * S * B * REPR_DIM * (REPR_DIM + ACTION_DIM + REPR_DIM)
    transcendentals = S * (REPR_DIM + B)            # BN rsqrt per feature + L2 rsqrt per row
    operands = (embedding, action, w1e, w1a, gamma, beta, w2t, b2)
    bytes_accessed = sum(int(a.size) * a.dtype.itemsize for a in operands) \
        + S * B * REPR_DIM * 4                      # output

    out = pl.pallas_call(
        predictor_kernel,
        out_shape=jax.ShapeDtypeStruct((S, B, REPR_DIM), jnp.float32),
        grid=(S,),
        in_specs=[
            batch_spec(REPR_DIM),                   # embedding (streamed)
            batch_spec(ACTION_DIM),                 # action    (streamed)
            resident((REPR_DIM, REPR_DIM)),         # w1e  (bf16, resident)
            resident((ACTION_DIM, REPR_DIM)),       # w1a  (bf16, resident)
            resident((1, REPR_DIM)),                # gamma
            resident((1, REPR_DIM)),                # beta
            resident((REPR_DIM, REPR_DIM)),         # w2t  (bf16, resident)
            resident((1, REPR_DIM)),                # b2
        ],
        out_specs=pl.BlockSpec((None, B, REPR_DIM), lambda s: (s, 0, 0)),
        compiler_params=pltpu.CompilerParams(
            dimension_semantics=("parallel",)),     # v7x: shard batches over 2 TCs
        cost_estimate=pl.CostEstimate(flops=flops,
                                      transcendentals=transcendentals,
                                      bytes_accessed=bytes_accessed),
    )(*operands)
    return out[0] if squeeze else out


def init_params(key):
    """Deterministic synthetic parameters matching the module's shapes.

    fc1's transposed (in, out) weight is pre-split once at init into embedding rows
    (256, 256) and action rows (2, 256); matmul weights are stored in bf16 (MXU-native,
    halves weight DMA). BN affine / biases stay f32.
    """
    k1, k2, k3, k4 = jax.random.split(key, 4)
    fan_in1 = REPR_DIM + ACTION_DIM
    fan_in2 = REPR_DIM
    w1t = jax.random.uniform(k1, (fan_in1, REPR_DIM), jnp.float32,
                             -1.0 / jnp.sqrt(fan_in1), 1.0 / jnp.sqrt(fan_in1))
    b1 = jax.random.uniform(k2, (1, REPR_DIM), jnp.float32,
                            -1.0 / jnp.sqrt(fan_in1), 1.0 / jnp.sqrt(fan_in1))
    w2t = jax.random.uniform(k3, (fan_in2, REPR_DIM), jnp.float32,
                             -1.0 / jnp.sqrt(fan_in2), 1.0 / jnp.sqrt(fan_in2))
    b2 = jax.random.uniform(k4, (1, REPR_DIM), jnp.float32,
                            -1.0 / jnp.sqrt(fan_in2), 1.0 / jnp.sqrt(fan_in2))
    gamma = jnp.ones((1, REPR_DIM), jnp.float32)
    beta = jnp.zeros((1, REPR_DIM), jnp.float32)
    w1e = w1t[:REPR_DIM].astype(jnp.bfloat16)   # (256, 256)
    w1a = w1t[REPR_DIM:].astype(jnp.bfloat16)   # (2, 256)
    w2t = w2t.astype(jnp.bfloat16)              # (256, 256)
    return (w1e, w1a, b1, gamma, beta, w2t, b2)


def reference_forward(embedding, action, params):
    """Pure-JAX reference mirroring the PyTorch module for one (B, ...) batch.

    Keeps the fc1 bias (proving the in-kernel cancellation) and uses the same
    bf16 dot operands / f32 accumulation as the kernel so the comparison is tight.
    """
    w1e, w1a, b1, gamma, beta, w2t, b2 = params
    h = (jnp.dot(embedding.astype(jnp.bfloat16), w1e, preferred_element_type=jnp.float32)
         + jnp.dot(action.astype(jnp.bfloat16), w1a, preferred_element_type=jnp.float32)
         + b1)
    mean = jnp.mean(h, axis=0, keepdims=True)
    var = jnp.mean((h - mean) ** 2, axis=0, keepdims=True)
    h = (h - mean) / jnp.sqrt(var + BN_EPS) * gamma + beta
    h = jnp.maximum(h, 0.0)
    y = jnp.dot(h.astype(jnp.bfloat16), w2t, preferred_element_type=jnp.float32) + b2
    norm = jnp.sqrt(jnp.sum(y * y, axis=1, keepdims=True))
    return y / jnp.maximum(norm, L2_EPS)


if __name__ == "__main__":
    key = jax.random.PRNGKey(0)
    k_emb, k_act, k_par = jax.random.split(key, 3)

    S, B = 4, 8   # 4 independent BatchNorm batches of 8 rows each
    embedding = jax.random.normal(k_emb, (S, B, REPR_DIM), jnp.float32)
    action = jax.random.normal(k_act, (S, B, ACTION_DIM), jnp.float32)
    params = init_params(k_par)

    out = predictor_forward(embedding, action, params)
    out = jax.block_until_ready(out)

    ref = jnp.stack([reference_forward(embedding[s], action[s], params)
                     for s in range(S)])
    assert out.shape == (S, B, REPR_DIM)
    assert jnp.allclose(out, ref, atol=1e-2, rtol=1e-2), "mismatch vs JAX reference"

    print("KERNEL_OK")
</pallas_src>

<mosaic_0001>
module attributes {stable_mosaic.version = 11 : i64} {
  func.func @predictor_kernel(%arg0: i32, %arg1: memref<1x8x256xf32, #tpu.memory_space<vmem>>, %arg2: memref<1x8x2xf32, #tpu.memory_space<vmem>>, %arg3: memref<256x256xbf16, #tpu.memory_space<vmem>>, %arg4: memref<2x256xbf16, #tpu.memory_space<vmem>>, %arg5: memref<1x256xf32, #tpu.memory_space<vmem>>, %arg6: memref<1x256xf32, #tpu.memory_space<vmem>>, %arg7: memref<256x256xbf16, #tpu.memory_space<vmem>>, %arg8: memref<1x256xf32, #tpu.memory_space<vmem>>, %arg9: memref<1x8x256xf32, #tpu.memory_space<vmem>>) attributes {dimension_semantics = [#tpu.dimension_semantics<parallel>], iteration_bounds = array<i64: 4>, scalar_prefetch = 0 : i64, scratch_operands = 0 : i64, tpu.core_type = #tpu.core_type<tc>, window_params = [{transform_indices = @transform_0, window_bounds = array<i64: 1, 8, 256>}, {transform_indices = @transform_1, window_bounds = array<i64: 1, 8, 2>}, {pipeline_mode = #tpu.pipeline_mode<synchronous>, transform_indices = @transform_2, window_bounds = array<i64: 256, 256>}, {pipeline_mode = #tpu.pipeline_mode<synchronous>, transform_indices = @transform_3, window_bounds = array<i64: 2, 256>}, {pipeline_mode = #tpu.pipeline_mode<synchronous>, transform_indices = @transform_4, window_bounds = array<i64: 1, 256>}, {pipeline_mode = #tpu.pipeline_mode<synchronous>, transform_indices = @transform_5, window_bounds = array<i64: 1, 256>}, {pipeline_mode = #tpu.pipeline_mode<synchronous>, transform_indices = @transform_6, window_bounds = array<i64: 256, 256>}, {pipeline_mode = #tpu.pipeline_mode<synchronous>, transform_indices = @transform_7, window_bounds = array<i64: 1, 256>}, {transform_indices = @transform_8, window_bounds = array<i64: 1, 8, 256>}]} {
    %c0 = arith.constant 0 : index
    %c0_0 = arith.constant 0 : index
    %c0_1 = arith.constant 0 : index
    %0 = vector.load %arg1[%c0, %c0_0, %c0_1] : memref<1x8x256xf32, #tpu.memory_space<vmem>>, vector<1x8x256xf32>
    %1 = vector.shape_cast %0 : vector<1x8x256xf32> to vector<8x256xf32>
    %2 = arith.truncf %1 : vector<8x256xf32> to vector<8x256xbf16>
    %c0_2 = arith.constant 0 : index
    %c0_3 = arith.constant 0 : index
    %c0_4 = arith.constant 0 : index
    %3 = vector.load %arg2[%c0_2, %c0_3, %c0_4] : memref<1x8x2xf32, #tpu.memory_space<vmem>>, vector<1x8x2xf32>
    %4 = vector.shape_cast %3 : vector<1x8x2xf32> to vector<8x2xf32>
    %5 = arith.truncf %4 : vector<8x2xf32> to vector<8x2xbf16>
    %c0_5 = arith.constant 0 : index
    %c0_6 = arith.constant 0 : index
    %6 = vector.load %arg3[%c0_5, %c0_6] : memref<256x256xbf16, #tpu.memory_space<vmem>>, vector<256x256xbf16>
    %cst = arith.constant dense<0.000000e+00> : vector<8x256xf32>
    %7 = tpu.matmul %2, %6, %cst {dimension_numbers = #tpu.dot_dimension_numbers<[1], [0], [0], [1], [0, 0, 1, 1], [], []>} : vector<8x256xbf16>, vector<256x256xbf16>, vector<8x256xf32> -> vector<8x256xf32>
    %c0_7 = arith.constant 0 : index
    %c0_8 = arith.constant 0 : index
    %8 = vector.load %arg4[%c0_7, %c0_8] : memref<2x256xbf16, #tpu.memory_space<vmem>>, vector<2x256xbf16>
    %cst_9 = arith.constant dense<0.000000e+00> : vector<8x256xf32>
    %9 = tpu.matmul %5, %8, %cst_9 {dimension_numbers = #tpu.dot_dimension_numbers<[1], [0], [0], [1], [0, 0, 1, 1], [], []>} : vector<8x2xbf16>, vector<2x256xbf16>, vector<8x256xf32> -> vector<8x256xf32>
    %10 = arith.addf %7, %9 : vector<8x256xf32>
    %cst_10 = arith.constant dense<0.000000e+00> : vector<256xf32>
    %11 = vector.multi_reduction <add>, %10, %cst_10 [0] : vector<8x256xf32> to vector<256xf32>
    %12 = vector.shape_cast %11 : vector<256xf32> to vector<1x256xf32>
    %cst_11 = arith.constant 8.000000e+00 : f32
    %13 = vector.broadcast %cst_11 : f32 to vector<1x256xf32>
    %14 = arith.divf %12, %13 : vector<1x256xf32>
    %15 = vector.broadcast %14 : vector<1x256xf32> to vector<8x256xf32>
    %16 = arith.subf %10, %15 : vector<8x256xf32>
    %17 = arith.mulf %16, %16 : vector<8x256xf32>
    %cst_12 = arith.constant dense<0.000000e+00> : vector<256xf32>
    %18 = vector.multi_reduction <add>, %17, %cst_12 [0] : vector<8x256xf32> to vector<256xf32>
    %19 = vector.shape_cast %18 : vector<256xf32> to vector<1x256xf32>
    %cst_13 = arith.constant 8.000000e+00 : f32
    %20 = vector.broadcast %cst_13 : f32 to vector<1x256xf32>
    %21 = arith.divf %19, %20 : vector<1x256xf32>
    %c0_14 = arith.constant 0 : index
    %c0_15 = arith.constant 0 : index
    %22 = vector.load %arg5[%c0_14, %c0_15] : memref<1x256xf32, #tpu.memory_space<vmem>>, vector<1x256xf32>
    %cst_16 = arith.constant 9.99999974E-6 : f32
    %23 = vector.broadcast %cst_16 : f32 to vector<1x256xf32>
    %24 = arith.addf %21, %23 : vector<1x256xf32>
    %25 = math.rsqrt %24 : vector<1x256xf32>
    %26 = arith.mulf %22, %25 : vector<1x256xf32>
    %27 = vector.broadcast %26 : vector<1x256xf32> to vector<8x256xf32>
    %28 = arith.mulf %16, %27 : vector<8x256xf32>
    %c0_17 = arith.constant 0 : index
    %c0_18 = arith.constant 0 : index
    %29 = vector.load %arg6[%c0_17, %c0_18] : memref<1x256xf32, #tpu.memory_space<vmem>>, vector<1x256xf32>
    %30 = vector.broadcast %29 : vector<1x256xf32> to vector<8x256xf32>
    %31 = arith.addf %28, %30 : vector<8x256xf32>
    %cst_19 = arith.constant 0.000000e+00 : f32
    %32 = vector.broadcast %cst_19 : f32 to vector<8x256xf32>
    %33 = arith.maximumf %31, %32 : vector<8x256xf32>
    %34 = arith.truncf %33 : vector<8x256xf32> to vector<8x256xbf16>
    %c0_20 = arith.constant 0 : index
    %c0_21 = arith.constant 0 : index
    %35 = vector.load %arg7[%c0_20, %c0_21] : memref<256x256xbf16, #tpu.memory_space<vmem>>, vector<256x256xbf16>
    %cst_22 = arith.constant dense<0.000000e+00> : vector<8x256xf32>
    %36 = tpu.matmul %34, %35, %cst_22 {dimension_numbers = #tpu.dot_dimension_numbers<[1], [0], [0], [1], [0, 0, 1, 1], [], []>} : vector<8x256xbf16>, vector<256x256xbf16>, vector<8x256xf32> -> vector<8x256xf32>
    %c0_23 = arith.constant 0 : index
    %c0_24 = arith.constant 0 : index
    %37 = vector.load %arg8[%c0_23, %c0_24] : memref<1x256xf32, #tpu.memory_space<vmem>>, vector<1x256xf32>
    %38 = vector.broadcast %37 : vector<1x256xf32> to vector<8x256xf32>
    %39 = arith.addf %36, %38 : vector<8x256xf32>
    %40 = arith.mulf %39, %39 : vector<8x256xf32>
    %cst_25 = arith.constant dense<0.000000e+00> : vector<8xf32>
    %41 = vector.multi_reduction <add>, %40, %cst_25 [1] : vector<8x256xf32> to vector<8xf32>
    %42 = vector.shape_cast %41 : vector<8xf32> to vector<8x1xf32>
    %cst_26 = arith.constant 1.000000e-24 : f32
    %43 = vector.broadcast %cst_26 : f32 to vector<8x1xf32>
    %44 = arith.maximumf %42, %43 : vector<8x1xf32>
    %45 = math.rsqrt %44 : vector<8x1xf32>
    %46 = vector.broadcast %45 : vector<8x1xf32> to vector<8x256xf32>
    %47 = arith.mulf %39, %46 : vector<8x256xf32>
    %c0_27 = arith.constant 0 : index
    %c0_28 = arith.constant 0 : index
    %c0_29 = arith.constant 0 : index
    %48 = vector.load %arg9[%c0_27, %c0_28, %c0_29] : memref<1x8x256xf32, #tpu.memory_space<vmem>>, vector<1x8x256xf32>
    %49 = vector.shape_cast %48 : vector<1x8x256xf32> to vector<8x256xf32>
    %50 = vector.shape_cast %47 : vector<8x256xf32> to vector<1x8x256xf32>
    tpu.vector_store %arg9[%c0_27, %c0_28, %c0_29], %50 {strides = array<i32>} : memref<1x8x256xf32, #tpu.memory_space<vmem>>, vector<1x8x256xf32>,
    return
  }
  func.func @transform_0(%arg0: i32) -> (i32, i32, i32) {
    %c0_i32 = arith.constant 0 : i32
    %c0_i32_0 = arith.constant 0 : i32
    %c0_i32_1 = arith.constant 0 : i32
    return %arg0, %c0_i32, %c0_i32_0 : i32, i32, i32
  }
  func.func @transform_1(%arg0: i32) -> (i32, i32, i32) {
    %c0_i32 = arith.constant 0 : i32
    %c0_i32_0 = arith.constant 0 : i32
    %c0_i32_1 = arith.constant 0 : i32
    return %arg0, %c0_i32, %c0_i32_0 : i32, i32, i32
  }
  func.func @transform_2(%arg0: i32) -> (i32, i32) {
    %c0_i32 = arith.constant 0 : i32
    %c0_i32_0 = arith.constant 0 : i32
    %c0_i32_1 = arith.constant 0 : i32
    return %c0_i32, %c0_i32_0 : i32, i32
  }
  func.func @transform_3(%arg0: i32) -> (i32, i32) {
    %c0_i32 = arith.constant 0 : i32
    %c0_i32_0 = arith.constant 0 : i32
    %c0_i32_1 = arith.constant 0 : i32
    return %c0_i32, %c0_i32_0 : i32, i32
  }
  func.func @transform_4(%arg0: i32) -> (i32, i32) {
    %c0_i32 = arith.constant 0 : i32
    %c0_i32_0 = arith.constant 0 : i32
    %c0_i32_1 = arith.constant 0 : i32
    return %c0_i32, %c0_i32_0 : i32, i32
  }
  func.func @transform_5(%arg0: i32) -> (i32, i32) {
    %c0_i32 = arith.constant 0 : i32
    %c0_i32_0 = arith.constant 0 : i32
    %c0_i32_1 = arith.constant 0 : i32
    return %c0_i32, %c0_i32_0 : i32, i32
  }
  func.func @transform_6(%arg0: i32) -> (i32, i32) {
    %c0_i32 = arith.constant 0 : i32
    %c0_i32_0 = arith.constant 0 : i32
    %c0_i32_1 = arith.constant 0 : i32
    return %c0_i32, %c0_i32_0 : i32, i32
  }
  func.func @transform_7(%arg0: i32) -> (i32, i32) {
    %c0_i32 = arith.constant 0 : i32
    %c0_i32_0 = arith.constant 0 : i32
    %c0_i32_1 = arith.constant 0 : i32
    return %c0_i32, %c0_i32_0 : i32, i32
  }
  func.func @transform_8(%arg0: i32) -> (i32, i32, i32) {
    %c0_i32 = arith.constant 0 : i32
    %c0_i32_0 = arith.constant 0 : i32
    %c0_i32_1 = arith.constant 0 : i32
    return %arg0, %c0_i32, %c0_i32_0 : i32, i32, i32
  }
}

</mosaic_0001>

<bundles_post_ra>
// kernel: tpu_custom_call.1
= control target key start
LH: loop header
LB: loop body
LE: loop exit
PB: predicated region body
PF: predicated region fallthrough
CT: control target
= control target key end

     0   :  { %13 = vsyncpa [#allocation3], 0  ;;  %s1876_s0 = inlined_call_operand.hbm [shape: f32[4,8,256], index: 0, kind: input, shape index: {}]   ;;  %s1877_s1 = inlined_call_operand.vmem [shape: f32[4,8,2], index: 1, kind: input, shape index: {}]   ;;  %s1878_s2 = inlined_call_operand.hbm [shape: bf16[256,256], index: 2, kind: input, shape index: {}]   ;;  %s1879_s3 = inlined_call_operand.vmem [shape: bf16[2,256], index: 3, kind: input, shape index: {}]   ;;  %s1880_s4 = inlined_call_operand.vmem [shape: f32[1,256], index: 4, kind: input, shape index: {}]   ;;  %s1881_s5 = inlined_call_operand.vmem [shape: f32[1,256], index: 5, kind: input, shape index: {}]   ;;  %s1882_s6 = inlined_call_operand.hbm [shape: bf16[256,256], index: 6, kind: input, shape index: {}]   ;;  %s1883_s7 = inlined_call_operand.vmem [shape: f32[1,256], index: 7, kind: input, shape index: {}]   ;;  %s1884_s8 = inlined_call_operand.hbm [shape: f32[4,8,256], index: 8, kind: output, shape index: {}]  }
   0x1   :  { %15 = vsyncpa [#allocation3 + $0x1], 0 }
   0x2   :  { %16 = vsyncpa [#allocation6], 0 }
   0x3   :  { %17 = vsyncpa [#allocation4], 0 }
   0x4   :  { %19 = vsyncpa [#allocation4 + $0x1], 0  ;;  %s1620_s27 = smov 0   ;;  %s1622_s28 = smov 0  }
   0x5   :  { %s1624_s29 = smov 0   ;;  %s1626_s30 = smov 0  }
   0x6 LB: > { %s1641_s9 = sadd.s32 4294967295, %s1565_s30   ;;  %s1144_s10 = sadd.s32 4294967294, %s1565_s30   ;;  %s1565_s30 = sphi %s1626_s30, %s1903_s30   ;;  %s1561_s29 = sphi %s1624_s29, %s1902_s29   ;;  %s1557_s28 = sphi %s1622_s28, %s1901_s28   ;;  %s1553_s27 = sphi %s1620_s27, %s1900_s27  }
   0x7   : > { %p45_p0 = scmp.ne.s32.totalorder %s1557_s28, %s1553_s27  ;;  %p1885_p1 = scmp.eq.s32.totalorder %s1641_s9, 0 }
   0x8   : > { %p227_p3 = scmp.eq.s32.totalorder %s1144_s10, 3  ;;  %p1145_p5 = scmp.ge.s32.totalorder %s1565_s30, 1 }
   0x9   : > { %p1650_p4 = por %p1885_p1, %p45_p0  ;;  %p234_p7 = scmp.lt.s32.totalorder %s1565_s30, 5 }
   0xa   : > { %p1655_p6 = por %p227_p3, %p45_p0  ;;  %s1567_s14 = smov [#allocation5]  }
   0xb   : > { %s1888_s11 = scalar_select %p1650_p4, 1, 0 }
   0xc   : > { %s1889_s12 = scalar_select %p1655_p6, 1, 0 }
   0xd   : > { %p1660_p8 = pnand %p1145_p5, %p234_p7  ;;  %s246_s15 = sshll.u32 %s1567_s14, 4  ;;  %s247_s15 = int_to_ptr.vmem [resolvable:$true] %s246_s15 }
   0xe   : > { %s1568_s17 = smov [#allocation7]   ;;  %s1409_s21 = scalar_lea.hbm %s1878_s2, 4096 }
   0xf   : > { %s1890_s13 = scalar_select %p1660_p8, 1, 0 }
  0x10   : > { %p1248_p9 = pneg %p1660_p8  ;;  %s268_s18 = sshll.u32 %s1568_s17, 4  ;;  %s1672_s18 = int_to_ptr.vmem [resolvable:$true] %s268_s18 }
  0x11   : > { %p1410_p11 = scmp.ne.s32.totalorder %s1878_s2, %s1409_s21  ;;  %p1416_p3 = scmp.lt.u32.totalorder %s1409_s21, %s1878_s2 }
  0x12   : > { %p1668_p10 = pnand %p1248_p9, %p1885_p1 }
  0x14   : > { %p1411_p12 = pneg %p1668_p10 }
  0x16   : > { %p1412_p13 = pnand %p1411_p12, %p1410_p11 }
  0x18   : > { %p1413_p0 = pneg %p1412_p13 }
  0x1a   : > { %p1418_p5 = pnand %p1416_p3, %p1413_p0 }
  0x1c   : > { %1421 = shalt.err (!%p1418_p5)
}
  0x1d   : > { %s1422_s26 = scalar_lea.vmem %s247_s15, 4096  ;;  %p1430_p2 = scmp.lt.s32.totalorder %s247_s15, %s247_s15 }
  0x1e   : > { %p1423_p7 = scmp.ne.s32.totalorder %s247_s15, %s1422_s26  ;;  %p1431_p6 = scmp.lt.s32.totalorder %s1422_s26, %s1422_s26 }
  0x20   : > { %p1425_p9 = pnand %p1423_p7, %p1411_p12  ;;  %p1432_p4 = por %p1431_p6, %p1430_p2 }
  0x22   : > { %p1426_p1 = pneg %p1425_p9 }
  0x24   : > { %p1433_p8 = pnand %p1432_p4, %p1426_p1 }
  0x26   : > { %1436 = shalt.err (!%p1433_p8)
}
  0x27   : > { %s1569_s10 = smov 128   ;;  %s1570_s14 = smov 8  }
  0x28   : > { %1251 = dma.hbm_to_vmem [thread:$0]  (!%p1668_p10), %s1878_s2, 4096, %s247_s15, [#allocation6], %s1569_s10, %s1569_s10, %s1570_s14  }
  0x29   : > { %s1437_s22 = scalar_lea.hbm %s1882_s6, 4096 }
  0x2a   : > { %p1438_p11 = scmp.ne.s32.totalorder %s1882_s6, %s1437_s22  ;;  %p1444_p4 = scmp.lt.u32.totalorder %s1437_s22, %s1882_s6 }
  0x2c   : > { %p1440_p1 = pnand %p1438_p11, %p1411_p12 }
  0x2e   : > { %p1441_p2 = pneg %p1440_p1 }
  0x30   : > { %p1446_p6 = pnand %p1444_p4, %p1441_p2 }
  0x32   : > { %1449 = shalt.err (!%p1446_p6)
}
  0x33   : > { %s1450_s15 = scalar_lea.vmem %s1672_s18, 4096  ;;  %p1458_p3 = scmp.lt.s32.totalorder %s1672_s18, %s1672_s18 }
  0x34   : > { %p1451_p8 = scmp.ne.s32.totalorder %s1672_s18, %s1450_s15  ;;  %p1459_p5 = scmp.lt.s32.totalorder %s1450_s15, %s1450_s15 }
  0x36   : > { %p1453_p13 = pnand %p1451_p8, %p1411_p12  ;;  %p1460_p7 = por %p1459_p5, %p1458_p3 }
  0x38   : > { %p1454_p0 = pneg %p1453_p13 }
  0x3a   : > { %p1461_p9 = pnand %p1460_p7, %p1454_p0 }
  0x3c   : > { %1464 = shalt.err (!%p1461_p9)
}
  0x3d   : > { %1254 = dma.hbm_to_vmem [thread:$0]  (!%p1668_p10), %s1882_s6, 4096, %s1672_s18, [#allocation6], %s1569_s10, %s1569_s10, %s1570_s14  }
  0x3e   : > { %s1722_s20 = sadd.s32 1, %s1565_s30   ;;  %s32_s16 = sadd.s32 1, %s1561_s29 }
  0x3f   : > { %s29_s21 = ssub.s32 %s1565_s30, %s1722_s20  ;;  %p39_p12 = scmp.ne.s32.totalorder %s1561_s29, %s1557_s28 }
  0x40   : > { %p30_p11 = scmp.eq.s32.totalorder %s29_s21, 0  ;;  %p40_p1 = scmp.eq.s32.totalorder %s1565_s30, 0 }
  0x41   : > { %p1892_p2 = scmp.eq.s32.totalorder %s1641_s9, 3  ;;  %p1265_p6 = scmp.lt.s32.totalorder %s1565_s30, 4 }
  0x42   : > { %s1738_s23 = scalar_select %p30_p11, %s1561_s29, %s32_s16  }
  0x43   : > { %p1732_p4 = por %p1892_p2, %p39_p12  ;;  %p41_p8 = por %p40_p1, %p39_p12 }
  0x44   : > { %s285_s24 = sand.u32 1, %s1561_s29   ;;  %s1230_s18 = sshll.u32 %s1565_s30, 8 }
  0x45   : > { %s1149_s25 = sshll.u32 %s285_s24, 4  ;;  %s1745_s26 = scalar_lea.hbm %s1876_s0, %s1230_s18 }
  0x46   : > { %s289_s15 = scalar_lea.vmem [#allocation2], %s1149_s25  ;;  %p1749_p10 = pnand %p1265_p6, %p41_p8 }
  0x47   : > { %s297_s17 = sshll.u32 %s289_s15, 4  ;;  %s286_s16 = scalar_lea.sflag [#allocation3], %s285_s24  ;;  %s1747_s17 = int_to_ptr.vmem [resolvable:$true] %s297_s17 }
  0x48   : > { %s1465_s21 = scalar_lea.hbm %s1745_s26, 256  ;;  %p1467_p0 = pneg %p1749_p10 }
  0x49   : > { %p1466_p13 = scmp.ne.s32.totalorder %s1745_s26, %s1465_s21  ;;  %s1470_s10 = scalar_lea.hbm %s1876_s0, 1024 }
  0x4a   : > { %p1471_p7 = scmp.lt.u32.totalorder %s1745_s26, %s1876_s0  ;;  %p1472_p9 = scmp.lt.u32.totalorder %s1470_s10, %s1465_s21 }
  0x4b   : > { %p1468_p3 = pnand %p1467_p0, %p1466_p13  ;;  %p1474_p11 = scmp.lt.u32.totalorder %s1465_s21, %s1745_s26 }
  0x4c   : > { %p1473_p12 = por %p1472_p9, %p1471_p7 }
  0x4d   : > { %p1469_p5 = pneg %p1468_p3 }
  0x4e   : > { %p1475_p1 = por %p1474_p11, %p1473_p12 }
  0x50   : > { %p1476_p2 = pnand %p1475_p1, %p1469_p5 }
  0x52   : > { %1479 = shalt.err (!%p1476_p2)
}
  0x53   : > { %s1480_s24 = scalar_lea.vmem %s1747_s17, 256  ;;  %s1571_s18 = smov [#allocation2]  }
  0x54   : > { %p1481_p6 = scmp.ne.s32.totalorder %s1747_s17, %s1480_s24  ;;  %s1485_s25 = sshll.u32 %s1571_s18, 4  ;;  %s1486_s25 = int_to_ptr.vmem [resolvable:$false] %s1485_s25 }
  0x55   : > { %s1487_s14 = scalar_lea.vmem %s1486_s25, 512  ;;  %p1488_p3 = scmp.lt.s32.totalorder %s1747_s17, %s1486_s25 }
  0x56   : > { %p1483_p8 = pnand %p1481_p6, %p1467_p0  ;;  %p1489_p7 = scmp.lt.s32.totalorder %s1487_s14, %s1480_s24 }
  0x58   : > { %p1484_p13 = pneg %p1483_p8  ;;  %p1490_p9 = por %p1489_p7, %p1488_p3 }
  0x5a   : > { %p1491_p12 = pnand %p1490_p9, %p1484_p13 }
  0x5c   : > { %1494 = shalt.err (!%p1491_p12)
}
  0x5d   : > { %1258 = dma.hbm_to_vmem [thread:$0]  (!%p1749_p10), %s1745_s26, 256, %s1747_s17, %s286_s16  }
  0x5e   : > { %p1895_p5 = scmp.ne.s32.totalorder %s1890_s13, 0 }
  0x5f   : > { %s1781_s21 = sand.u32 (!%p1895_p5), 1, %s1557_s28   ;;  %p1896_p0 = scmp.ne.s32.totalorder (!%p1895_p5), %s1888_s11, 0 }
  0x60   : > { %313 = sbr.rel (%p1895_p5) target bundleno = 851 (0x353), region = 52  ;;  %s1153_s10 = sshll.u32 (!%p1895_p5), %s1781_s21, 4 }
  0x61   : > { %s316_s15 = scalar_lea.sflag (!%p1895_p5), [#allocation3], %s1781_s21  ;;  %s1787_s24 = scalar_lea.vmem (!%p1895_p5), [#allocation2], %s1153_s10 }
  0x67   : > { %1540 = dma.done.wait (%p1896_p0), %s316_s15, 256  }
  0x68   : > { %1542 = vsyncadd (%p1896_p0), %s316_s15, 4294967040  ;;  %p1897_p10 = scmp.eq.s32.totalorder %s1641_s9, 0 }
  0x6a   : > { %1544 = dma.done.wait (%p1897_p10), [#allocation6], 8192   ;;  %p1898_p11 = pmov %p1897_p10 }
  0x6b   : > { %v420_v0 = vlaneseq  ;;  %v1572_v1 = vmov 1966171168   ;;  %v1573_v3 = vmov 0   ;;  %p364_p1 = scmp.lt.s32.totalorder %s1641_s9, 3  ;;  %vm435_vm0 = vcmask 1040384   ;;  %v370_v25 = vld [vmem:[%s1787_s24 + $0x8] sm:$0xff] }
  0x6c   : > { %1546 = vsyncadd (%p1898_p11), [#allocation6], 4294959104  ;;  %v418_v2 = vunpack.c.l.s4 %v1572_v1  ;;  %474 = vmatprep.mubr.bf16.mxu0 %v1573_v3  ;;  %v1158_v7 = vld.sshfl [vmem:[%s1879_s3] sm:$0x11 pattern:$0x75316420]  ;;  %v372_v26 = vpack.c.bf16 %v370_v25, %v370_v25 }
  0x6d   : > { %v1798_v4 = vshrl.u32 %v420_v0, 7  ;;  %s365_s13 = scalar_select %p364_p1, %s1641_s9, 3  ;;  %v416_v8 = vcombine.high %v1158_v7, %v1158_v7  ;;  %v1309_v13 = vld [vmem:[#allocation5 + $0x4] ss:$8 sps:$4 sm:$0xff]   ;;  %v1307_v15 = vld [vmem:[#allocation5] ss:$8 sps:$4 sm:$0xff]  }
  0x6e   : > { %v419_v5 = vunpack.c.0.s8 %v418_v2  ;;  %vm431_vm1 = vcmask 15360   ;;  %v1312_v16 = vld [vmem:[#allocation5 + $0x14] ss:$8 sps:$4 sm:$0xff]   ;;  %v1310_v17 = vld [vmem:[#allocation5 + $0x10] ss:$8 sps:$4 sm:$0xff]   ;;  %s1231_s26 = sshll.u32 %s1641_s9, 8 }
  0x6f   : > { %s1157_s11 = sshll.u32 %s365_s13, 3  ;;  %v1315_v18 = vld [vmem:[#allocation5 + $0x24] ss:$8 sps:$4 sm:$0xff]   ;;  %v1313_v19 = vld [vmem:[#allocation5 + $0x20] ss:$8 sps:$4 sm:$0xff]   ;;  %s363_s17 = scalar_lea.vmem [#allocation8], %s1153_s10 }
  0x70   : > { %v1802_v6 = vsub.s32 %v419_v5, %v1798_v4  ;;  %s367_s19 = scalar_lea.vmem %s1877_s1, %s1157_s11  ;;  %v1318_v20 = vld [vmem:[#allocation5 + $0x34] ss:$8 sps:$4 sm:$0xff]   ;;  %v1316_v21 = vld [vmem:[#allocation5 + $0x30] ss:$8 sps:$4 sm:$0xff]   ;;  %v1321_v22 = vld [vmem:[#allocation5 + $0x44] ss:$8 sps:$4 sm:$0xff]   ;;  %s1833_s25 = scalar_lea.hbm %s1884_s8, %s1231_s26 }
  0x71   : > { %v373_v10 = vld [vmem:[%s367_s19] sm:$0xff]  ;;  %v1324_v24 = vld [vmem:[#allocation5 + $0x54] ss:$8 sps:$4 sm:$0xff]   ;;  %v1322_v27 = vld [vmem:[#allocation5 + $0x50] ss:$8 sps:$4 sm:$0xff]   ;;  %s1043_s19 = sshll.u32 %s363_s17, 4  ;;  %s1835_s19 = int_to_ptr.vmem [resolvable:$true] %s1043_s19 }
  0x72   : > { %v423_v9 = vrot.slane %v1158_v7, %v1802_v6  ;;  %v430_v11 = vrot.slane %v416_v8, %v1802_v6  ;;  %v374_v14 = vpack.c.bf16 %v373_v10, %v373_v10  ;;  %v1319_v23 = vld [vmem:[#allocation5 + $0x40] ss:$8 sps:$4 sm:$0xff]   ;;  %v1327_v28 = vld [vmem:[#allocation5 + $0x64] ss:$8 sps:$4 sm:$0xff]   ;;  %v1330_v30 = vld [vmem:[#allocation5 + $0x74] ss:$8 sps:$4 sm:$0xff]  }
  0x73   : > { %v1325_v29 = vld [vmem:[#allocation5 + $0x60] ss:$8 sps:$4 sm:$0xff]   ;;  %v1328_v31 = vld [vmem:[#allocation5 + $0x70] ss:$8 sps:$4 sm:$0xff]   ;;  %v1333_v32 = vld [vmem:[#allocation5 + $0x84] ss:$8 sps:$4 sm:$0xff]  }
  0x74   : > { %v437_v12 = vsel %vm435_vm0, %v423_v9, 0  ;;  %1159 = vmatprep.subr.msk.bf16.mxu0 %vm435_vm0, %v430_v11  ;;  %v1331_v33 = vld [vmem:[#allocation5 + $0x80] ss:$8 sps:$4 sm:$0xff]   ;;  %v1336_v34 = vld [vmem:[#allocation5 + $0x94] ss:$8 sps:$4 sm:$0xff]   ;;  %s1029_s14 = scalar_lea.sflag [#allocation4], %s1781_s21 }
  0x75   : > { %443 = vmatpush1.bf16.msra.mxu0 %v437_v12  ;;  %v1334_v35 = vld [vmem:[#allocation5 + $0x90] ss:$8 sps:$4 sm:$0xff]   ;;  %v1339_v36 = vld [vmem:[#allocation5 + $0xa4] ss:$8 sps:$4 sm:$0xff]   ;;  %v1337_v37 = vld [vmem:[#allocation5 + $0xa0] ss:$8 sps:$4 sm:$0xff]  }
  0x76   : > { %643 = vmatprep.subr.bf16.mxu0 %v1309_v13  ;;  %v1342_v38 = vld [vmem:[#allocation5 + $0xb4] ss:$8 sps:$4 sm:$0xff]   ;;  %v1340_v39 = vld [vmem:[#allocation5 + $0xb0] ss:$8 sps:$4 sm:$0xff]   ;;  %v1345_v40 = vld [vmem:[#allocation5 + $0xc4] ss:$8 sps:$4 sm:$0xff]  }
  0x77   : > { %v1343_v41 = vld [vmem:[#allocation5 + $0xc0] ss:$8 sps:$4 sm:$0xff]   ;;  %v1348_v42 = vld [vmem:[#allocation5 + $0xd4] ss:$8 sps:$4 sm:$0xff]   ;;  %v1346_v43 = vld [vmem:[#allocation5 + $0xd0] ss:$8 sps:$4 sm:$0xff]  }
  0x78   : > { %1160 = vmatmul.mubr.msk.bf16.vlgmr.msra.gmra.mrb[0].mxu0 %vm431_vm1, %v374_v14  ;;  %v1351_v44 = vld [vmem:[#allocation5 + $0xe4] ss:$8 sps:$4 sm:$0xff]   ;;  %v1349_v45 = vld [vmem:[#allocation5 + $0xe0] ss:$8 sps:$4 sm:$0xff]   ;;  %v1354_v46 = vld [vmem:[#allocation5 + $0xf4] ss:$8 sps:$4 sm:$0xff]  }
  0x79   : > { %644 = vmatpush1.bf16.msra.mxu0 %v1307_v15  ;;  %675 = vmatprep.mubr.bf16.mxu0 %v372_v26  ;;  %v1352_v47 = vld [vmem:[#allocation5 + $0xf0] ss:$8 sps:$4 sm:$0xff]   ;;  %v1355_v50 = vld [vmem:[#allocation7 + $0x4] ss:$8 sps:$4 sm:$0xff]   ;;  %v1357_v51 = vld [vmem:[#allocation7] ss:$8 sps:$4 sm:$0xff]  }
  0x7a   : > { %645 = vmatprep.subr.bf16.mxu0 %v1312_v16  ;;  %v369_v48 = vld [vmem:[%s1787_s24] sm:$0xff]  ;;  %976 = vmatprep.subr.bf16.mxu1 %v1355_v50  ;;  %s1495_s9 = scalar_lea.vmem %s1835_s19, 256  ;;  %s1574_s10 = smov [#allocation8]  }
  0x7b   : > { %v371_v49 = vpack.c.bf16 %v369_v48, %v369_v48  ;;  %977 = vmatpush1.bf16.msra.mxu1 %v1357_v51  ;;  %v1358_v52 = vld [vmem:[#allocation7 + $0x14] ss:$8 sps:$4 sm:$0xff]   ;;  %v1360_v53 = vld [vmem:[#allocation7 + $0x10] ss:$8 sps:$4 sm:$0xff]   ;;  %v1361_v54 = vld [vmem:[#allocation7 + $0x24] ss:$8 sps:$4 sm:$0xff]   ;;  %p1496_p2 = scmp.ne.s32.totalorder %s1835_s19, %s1495_s9 }
  0x7c   : > { %978 = vmatprep.subr.bf16.mxu1 %v1358_v52  ;;  %v1363_v55 = vld [vmem:[#allocation7 + $0x20] ss:$8 sps:$4 sm:$0xff]   ;;  %v1364_v56 = vld [vmem:[#allocation7 + $0x34] ss:$8 sps:$4 sm:$0xff]   ;;  %v1366_v57 = vld [vmem:[#allocation7 + $0x30] ss:$8 sps:$4 sm:$0xff]  }
  0x7d   : > { %646 = vmatpush1.bf16.msra.mxu0 %v1310_v17  ;;  %v1367_v58 = vld [vmem:[#allocation7 + $0x44] ss:$8 sps:$4 sm:$0xff]   ;;  %v1369_v59 = vld [vmem:[#allocation7 + $0x40] ss:$8 sps:$4 sm:$0xff]   ;;  %v1370_v60 = vld [vmem:[#allocation7 + $0x54] ss:$8 sps:$4 sm:$0xff]   ;;  %p1497_p6 = pnand %p1496_p2, %p1732_p4 }
  0x7e   : > { %647 = vmatprep.subr.bf16.mxu0 %v1315_v18  ;;  %v1372_v61 = vld [vmem:[#allocation7 + $0x50] ss:$8 sps:$4 sm:$0xff]   ;;  %v1373_v62 = vld [vmem:[#allocation7 + $0x64] ss:$8 sps:$4 sm:$0xff]   ;;  %v1375_v63 = vld [vmem:[#allocation7 + $0x60] ss:$8 sps:$4 sm:$0xff]  }
  0x7f   : > { %979 = vmatpush1.bf16.msra.mxu1 %v1360_v53  ;;  %v1376_v0 = vld [vmem:[#allocation7 + $0x74] ss:$8 sps:$4 sm:$0xff]   ;;  %v1378_v1 = vld [vmem:[#allocation7 + $0x70] ss:$8 sps:$4 sm:$0xff]   ;;  %v1379_v2 = vld [vmem:[#allocation7 + $0x84] ss:$8 sps:$4 sm:$0xff]   ;;  %p1498_p8 = pneg %p1497_p6 }
  0x80   : > { %980 = vmatprep.subr.bf16.mxu1 %v1361_v54  ;;  %v1381_v3 = vld [vmem:[#allocation7 + $0x80] ss:$8 sps:$4 sm:$0xff]   ;;  %v1382_v5 = vld [vmem:[#allocation7 + $0x94] ss:$8 sps:$4 sm:$0xff]   ;;  %v1384_v7 = vld [vmem:[#allocation7 + $0x90] ss:$8 sps:$4 sm:$0xff]  }
  0x81   : > { %648 = vmatpush1.bf16.msra.mxu0 %v1313_v19  ;;  %v1385_v8 = vld [vmem:[#allocation7 + $0xa4] ss:$8 sps:$4 sm:$0xff]   ;;  %v1387_v9 = vld [vmem:[#allocation7 + $0xa0] ss:$8 sps:$4 sm:$0xff]   ;;  %v1388_v10 = vld [vmem:[#allocation7 + $0xb4] ss:$8 sps:$4 sm:$0xff]  }
  0x82   : > { %649 = vmatprep.subr.bf16.mxu0 %v1318_v20  ;;  %v1390_v11 = vld [vmem:[#allocation7 + $0xb0] ss:$8 sps:$4 sm:$0xff]   ;;  %v1391_v12 = vld [vmem:[#allocation7 + $0xc4] ss:$8 sps:$4 sm:$0xff]   ;;  %v1393_v13 = vld [vmem:[#allocation7 + $0xc0] ss:$8 sps:$4 sm:$0xff]  }
  0x83   : > { %981 = vmatpush1.bf16.msra.mxu1 %v1363_v55  ;;  %v1394_v14 = vld [vmem:[#allocation7 + $0xd4] ss:$8 sps:$4 sm:$0xff]   ;;  %v1396_v15 = vld [vmem:[#allocation7 + $0xd0] ss:$8 sps:$4 sm:$0xff]   ;;  %v1397_v16 = vld [vmem:[#allocation7 + $0xe4] ss:$8 sps:$4 sm:$0xff]  }
  0x84   : > { %982 = vmatprep.subr.bf16.mxu1 %v1364_v56  ;;  %v1399_v17 = vld [vmem:[#allocation7 + $0xe0] ss:$8 sps:$4 sm:$0xff]   ;;  %v1400_v18 = vld [vmem:[#allocation7 + $0xf4] ss:$8 sps:$4 sm:$0xff]   ;;  %v1402_v19 = vld [vmem:[#allocation7 + $0xf0] ss:$8 sps:$4 sm:$0xff]  }
  0x85   : > { %650 = vmatpush1.bf16.msra.mxu0 %v1316_v21  ;;  %s1499_s15 = sshll.u32 %s1574_s10, 4  ;;  %s1500_s15 = int_to_ptr.vmem [resolvable:$false] %s1499_s15 }
  0x86   : > { %651 = vmatprep.subr.bf16.mxu0 %v1321_v22  ;;  %s1501_s24 = scalar_lea.vmem %s1500_s15, 512  ;;  %p1502_p13 = scmp.lt.s32.totalorder %s1835_s19, %s1500_s15 }
  0x87   : > { %983 = vmatpush1.bf16.msra.mxu1 %v1366_v57  ;;  %p1503_p3 = scmp.lt.s32.totalorder %s1501_s24, %s1495_s9 }
  0x88   : > { %984 = vmatprep.subr.bf16.mxu1 %v1367_v58 }
  0x89   : > { %652 = vmatpush1.bf16.msra.mxu0 %v1319_v23  ;;  %p1504_p7 = por %p1503_p3, %p1502_p13 }
  0x8a   : > { %653 = vmatprep.subr.bf16.mxu0 %v1324_v24 }
  0x8b   : > { %985 = vmatpush1.bf16.msra.mxu1 %v1369_v59  ;;  %p1505_p9 = pnand %p1504_p7, %p1498_p8 }
  0x8c   : > { %986 = vmatprep.subr.bf16.mxu1 %v1370_v60 }
  0x8d   : > { %654 = vmatpush1.bf16.msra.mxu0 %v1322_v27 }
  0x8e   : > { %655 = vmatprep.subr.bf16.mxu0 %v1327_v28 }
  0x8f   : > { %987 = vmatpush1.bf16.msra.mxu1 %v1372_v61 }
  0x90   : > { %988 = vmatprep.subr.bf16.mxu1 %v1373_v62  ;;  %v717_v62 = vld [vmem:[%s1880_s4] sm:$0x3] }
  0x91   : > { %656 = vmatpush1.bf16.msra.mxu0 %v1325_v29 }
  0x92   : > { %657 = vmatprep.subr.bf16.mxu0 %v1330_v30 }
  0x93   : > { %989 = vmatpush1.bf16.msra.mxu1 %v1375_v63 }
  0x94   : > { %990 = vmatprep.subr.bf16.mxu1 %v1376_v0  ;;  %v744_v0 = vsub.s32 0, %v1798_v4 }
  0x95   : > { %658 = vmatpush1.bf16.msra.mxu0 %v1328_v31 }
  0x96   : > { %659 = vmatprep.subr.bf16.mxu0 %v1333_v32 }
  0x97   : > { %991 = vmatpush1.bf16.msra.mxu1 %v1378_v1  ;;  %v748_v1 = vsub.s32 1, %v1798_v4  ;;  %v804_v4 = vld [vmem:[%s1883_s7] sm:$0x3] }
  0x98   : > { %992 = vmatprep.subr.bf16.mxu1 %v1379_v2  ;;  %v754_v2 = vld [vmem:[%s1881_s5] sm:$0x3] }
  0x99   : > { %660 = vmatpush1.bf16.msra.mxu0 %v1331_v33 }
  0x9a   : > { %661 = vmatprep.subr.bf16.mxu0 %v1336_v34 }
  0x9b   : > { %993 = vmatpush1.bf16.msra.mxu1 %v1381_v3 }
  0x9c   : > { %994 = vmatprep.subr.bf16.mxu1 %v1382_v5 }
  0x9d   : > { %662 = vmatpush1.bf16.msra.mxu0 %v1334_v35 }
  0x9e   : > { %663 = vmatprep.subr.bf16.mxu0 %v1339_v36 }
  0x9f   : > { %995 = vmatpush1.bf16.msra.mxu1 %v1384_v7  ;;  %v759_v7 = vrot.slane %v754_v2, %v744_v0 }
  0xa0   : > { %996 = vmatprep.subr.bf16.mxu1 %v1385_v8  ;;  %v763_v8 = vrot.slane %v754_v2, %v748_v1 }
  0xa1   : > { %664 = vmatpush1.bf16.msra.mxu0 %v1337_v37 }
  0xa2   : > { %665 = vmatprep.subr.bf16.mxu0 %v1342_v38 }
  0xa3   : > { %997 = vmatpush1.bf16.msra.mxu1 %v1387_v9 }
  0xa4   : > { %998 = vmatprep.subr.bf16.mxu1 %v1388_v10 }
  0xa5   : > { %666 = vmatpush1.bf16.msra.mxu0 %v1340_v39 }
  0xa6   : > { %667 = vmatprep.subr.bf16.mxu0 %v1345_v40 }
  0xa7   : > { %999 = vmatpush1.bf16.msra.mxu1 %v1390_v11 }
  0xa8   : > { %1000 = vmatprep.subr.bf16.mxu1 %v1391_v12 }
  0xa9   : > { %668 = vmatpush1.bf16.msra.mxu0 %v1343_v41 }
  0xaa   : > { %669 = vmatprep.subr.bf16.mxu0 %v1348_v42 }
  0xab   : > { %1001 = vmatpush1.bf16.msra.mxu1 %v1393_v13 }
  0xac   : > { %1002 = vmatprep.subr.bf16.mxu1 %v1394_v14 }
  0xad   : > { %670 = vmatpush1.bf16.msra.mxu0 %v1346_v43 }
  0xae   : > { %671 = vmatprep.subr.bf16.mxu0 %v1351_v44 }
  0xaf   : > { %1003 = vmatpush1.bf16.msra.mxu1 %v1396_v15 }
  0xb0   : > { %1004 = vmatprep.subr.bf16.mxu1 %v1397_v16 }
  0xb1   : > { %672 = vmatpush1.bf16.msra.mxu0 %v1349_v45 }
  0xb2   : > { %673 = vmatprep.subr.bf16.mxu0 %v1354_v46 }
  0xb3   : > { %1005 = vmatpush1.bf16.msra.mxu1 %v1399_v17  ;;  %v809_v17 = vrot.slane %v804_v4, %v744_v0 }
  0xb4   : > { %1006 = vmatprep.subr.bf16.mxu1 %v1400_v18  ;;  %v813_v18 = vrot.slane %v804_v4, %v748_v1 }
  0xb5   : > { %674 = vmatpush1.bf16.msra.mxu0 %v1352_v47 }
  0xb7   : > { %1007 = vmatpush1.bf16.msra.mxu1 %v1402_v19 }
  0xb8   : > { %676 = vmatmul.mubr.bf16.vlgmr.msra.gmra.mrb[0].mxu0 %v371_v49 }
 0x18b   : > { %v677_v20 = vpop.f32.mrb[0].mxu0 }
 0x18c   : > { %v684_v21 = vrot.slane %v677_v20, 4  ;;  %v679_v22 = vpop.f32.mrb[1].mxu0 }
 0x18d   : > { %v690_v23 = vrot.slane %v679_v22, 4  ;;  %v681_v24 = vpop.f32.mrb[2].mxu0 }
 0x18e   : > { %v685_v25 = vadd.f32 %v684_v21, %v677_v20  ;;  %v682_v26 = vpop.f32.mrb[3].mxu0 }
 0x18f   : > { %v691_v27 = vadd.f32 %v690_v23, %v679_v22 }
 0x190   : > { %v686_v28 = vrot.slane %v685_v25, 2 }
 0x191   : > { %v692_v29 = vrot.slane %v691_v27, 2 }
 0x192   : > { %v687_v30 = vadd.f32 %v686_v28, %v685_v25 }
 0x193   : > { %v693_v31 = vadd.f32 %v692_v29, %v691_v27 }
 0x194   : > { %v688_v32 = vrot.slane %v687_v30, 1 }
 0x195   : > { %v694_v33 = vrot.slane %v693_v31, 1 }
 0x196   : > { %v689_v34 = vadd.f32 %v688_v32, %v687_v30 }
 0x197   : > { %v695_v35 = vadd.f32 %v694_v33, %v693_v31 }
 0x198   : > { %v697_v36 = vmul.f32 0.125, %v689_v34 }
 0x199   : > { %v698_v37 = vmul.f32 0.125, %v695_v35 }
 0x19a   : > { %v699_v38 = vsub.f32 %v677_v20, %v697_v36 }
 0x19b   : > { %v700_v39 = vsub.f32 %v679_v22, %v698_v37 }
 0x19c   : > { %v701_v40 = vmul.f32 %v699_v38, %v699_v38 }
 0x19d   : > { %v702_v41 = vmul.f32 %v700_v39, %v700_v39 }
 0x19e   : > { %v703_v42 = vrot.slane %v701_v40, 4 }
 0x19f   : > { %v709_v43 = vrot.slane %v702_v41, 4 }
 0x1a0   : > { %v704_v44 = vadd.f32 %v703_v42, %v701_v40 }
 0x1a1   : > { %v710_v45 = vadd.f32 %v709_v43, %v702_v41 }
 0x1a2   : > { %v705_v46 = vrot.slane %v704_v44, 2 }
 0x1a3   : > { %v711_v47 = vrot.slane %v710_v45, 2 }
 0x1a4   : > { %v706_v48 = vadd.f32 %v705_v46, %v704_v44 }
 0x1a5   : > { %v712_v49 = vadd.f32 %v711_v47, %v710_v45 }
 0x1a6   : > { %v707_v50 = vrot.slane %v706_v48, 1 }
 0x1a7   : > { %v713_v51 = vrot.slane %v712_v49, 1 }
 0x1a8   : > { %v708_v52 = vadd.f32 %v707_v50, %v706_v48 }
 0x1a9   : > { %v714_v53 = vadd.f32 %v713_v51, %v712_v49 }
 0x1aa   : > { %v715_v54 = vmul.f32 0.125, %v708_v52 }
 0x1ab   : > { %v716_v55 = vmul.f32 0.125, %v714_v53 }
 0x1ac   : > { %v718_v56 = vadd.f32 1e-05, %v715_v54 }
 0x1ad   : > { %v719_v57 = vadd.f32 1e-05, %v716_v55 }
 0x1ae   : > { %1403 = vrsqrt.f32 %v718_v56 }
 0x1af   : > { %1405 = vrsqrt.f32 %v719_v57 }
 0x1b8   : > { %v1404_v58 = vpop.eup %1403 }
 0x1b9   : > { %v1406_v59 = vpop.eup %1405 }
 0x1ba   : > { %v724_v60 = vcombine.low %v1404_v58, %v1406_v59 }
 0x1bc   : > { %v731_v61 = vrot.slane %v724_v60, %v1802_v6 }
 0x1be   : > { %v738_v63 = vrot.slane %v731_v61, %v1802_v6 }
 0x1c0   : > { %v740_v3 = vmul.f32 %v738_v63, %v717_v62 }
 0x1c2   : > { %v749_v5 = vrot.slane %v740_v3, %v748_v1  ;;  %v745_v9 = vrot.slane %v740_v3, %v744_v0 }
 0x1c4   : > { %v753_v10 = vmul.f32 %v749_v5, %v700_v39  ;;  %v752_v11 = vmul.f32 %v745_v9, %v699_v38 }
 0x1c6   : > { %v767_v12 = vadd.f32 %v763_v8, %v753_v10  ;;  %v766_v13 = vadd.f32 %v759_v7, %v752_v11 }
 0x1c8   : > { %v769_v14 = vmax.f32 %v767_v12, 0.0  ;;  %v768_v15 = vmax.f32 %v766_v13, 0.0 }
 0x1ca   : > { %v771_v6 = vpack.c.bf16 %v769_v14, %v769_v14  ;;  %v770_v16 = vpack.c.bf16 %v768_v15, %v768_v15 }
 0x1cc   : > { %1008 = vmatprep.mubr.bf16.mxu1 %v771_v6 }
 0x1cd   : > { %1009 = vmatmul.mubr.bf16.vlgmr.msra.gmra.mrb[0].mxu1 %v770_v16 }
 0x2a0   : > { %v1010_v19 = vpop.f32.mrb[0].mxu1 }
 0x2a1   : > { %v1011_v20 = vadd.f32 %v1010_v19, %v809_v17  ;;  %v1012_v21 = vpop.f32.mrb[1].mxu1 }
 0x2a2   : > { %v1013_v22 = vadd.f32 %v1012_v21, %v813_v18  ;;  %v1014_v23 = vpop.f32.mrb[2].mxu1 }
 0x2a3   : > { %v1015_v24 = vpop.f32.mrb[3].mxu1  ;;  %v1017_v25 = vmul.f32 %v1011_v20, %v1011_v20 }
 0x2a4   : > { %v1018_v26 = vmul.f32 %v1013_v22, %v1013_v22 }
 0x2a6   : > { %v1019_v27 = vadd.f32 %v1018_v26, %v1017_v25 }
 0x2a8   : > { %1020 = vadd.xlane.f32.xlu0 %v1019_v27 }
 0x335   : > { %v1021_v28 = vpop.xlane.xlu0 %1020 }
 0x336   : > { %v1022_v29 = vmax.f32 %v1021_v28, 1e-24 }
 0x338   : > { %1407 = vrsqrt.f32 %v1022_v29 }
 0x342   : > { %v1408_v30 = vpop.eup %1407 }
 0x343   : > { %v1024_v31 = vmul.f32 %v1408_v30, %v1011_v20  ;;  %v1025_v32 = vmul.f32 %v1408_v30, %v1013_v22 }
 0x345   : > { %1026 = vst [vmem:[%s363_s17] sm:$0xff] %v1024_v31  ;;  %1027 = vst [vmem:[%s363_s17 + $0x8] sm:$0xff] %v1025_v32 }
 0x346   : > { %1508 = shalt.err (!%p1505_p9)
}
 0x347   : > { %s1509_s21 = scalar_lea.hbm %s1833_s25, 256  ;;  %s1513_s26 = scalar_lea.hbm %s1884_s8, 1024 }
 0x348   : > { %p1510_p12 = scmp.ne.s32.totalorder %s1833_s25, %s1509_s21  ;;  %p1514_p10 = scmp.lt.u32.totalorder %s1833_s25, %s1884_s8 }
 0x349   : > { %p1515_p11 = scmp.lt.u32.totalorder %s1513_s26, %s1509_s21  ;;  %p1517_p2 = scmp.lt.u32.totalorder %s1509_s21, %s1833_s25 }
 0x34a   : > { %p1511_p5 = pnand %p1510_p12, %p1732_p4 }
 0x34b   : > { %p1516_p1 = por %p1515_p11, %p1514_p10 }
 0x34c   : > { %p1512_p0 = pneg %p1511_p5 }
 0x34d   : > { %p1518_p6 = por %p1517_p2, %p1516_p1 }
 0x34f   : > { %p1519_p8 = pnand %p1518_p6, %p1512_p0 }
 0x351   : > { %1522 = shalt.err (!%p1519_p8)
}
 0x352   : > { %1246 = dma.vmem_to_hbm [thread:$0]  (%p1732_p4), %s1835_s19, 256, %s1833_s25, %s1029_s14  }
 0x353 PF: > { %p1268_p13 = scmp.ge.s32.totalorder %s1565_s30, 2  ;;  %s1055_s18 = sand.u32 1, %s1553_s27  }
 0x354   : > { %p1899_p3 = scmp.ne.s32.totalorder %s1889_s12, 0  ;;  %s1056_s9 = scalar_lea.sflag [#allocation4], %s1055_s18 }
 0x356   : > { %p1260_p7 = pnand %p1268_p13, %p1899_p3 }
 0x358   : > { %1548 = dma.done.wait (!%p1260_p7), %s1056_s9, 256  }
 0x359   : > { %1550 = vsyncadd (!%p1260_p7), %s1056_s9, 4294967040  ;;  %p22_p9 = scmp.ge.s32.totalorder %s1722_s20, 6   ;;  %s1900_s27 = smov %s1557_s28 }
 0x35a   : > { %s1901_s28 = smov %s1561_s29  ;;  %s1902_s29 = smov %s1738_s23 }
 0x35b   : > { %s1903_s30 = smov %s1722_s20  ;;  %24 = sbr.rel (!%p22_p9) target bundleno = 6 (0x6), region = 108 }
 0x362   :  { %1061 = vsyncpa [#allocation3], 1 }
 0x363   :  { %1063 = vsyncpa [#allocation3 + $0x1], 1 }
 0x364   :  { %1064 = vsyncpa [#allocation6], 1 }
 0x365   :  { %1065 = vsyncpa [#allocation4], 1 }
 0x366   :  { %1067 = vsyncpa [#allocation4 + $0x1], 1 }

</bundles_post_ra>
